<compile_context>
chip_gen: v7x
topology: tpu7x:2x2x1
jax: 0.10.0
libtpu: 0.0.40
codegen_flags: <defaults>
</compile_context>

<pallas_src>
import functools

import jax
import jax.numpy as jnp
from jax.experimental import pallas as pl
from jax.experimental.pallas import tpu as pltpu


def _start_logits_masked_kernel(h_ref, w_ref, b_ref, m_ref, out_ref, *, penalty):
    # h_ref: (TR, H) native dtype | w_ref: (1, H) | b_ref: (1,) f32 in SMEM
    # m_ref: (1, TR)              | out_ref: (1, TR)
    h = h_ref[...].astype(jnp.float32)
    w = w_ref[...].astype(jnp.float32)
    col = jnp.sum(h * w, axis=-1)                 # (TR,)  f32 accumulate (VPU mul + XLU reduce)
    x = col[None, :] + b_ref[0]                   # (1, TR) lane-dense
    m = m_ref[...].astype(jnp.float32)
    x = x * m - penalty * (1.0 - m)
    out_ref[...] = x.astype(out_ref.dtype)


def _start_logits_kernel(h_ref, w_ref, b_ref, out_ref):
    h = h_ref[...].astype(jnp.float32)
    w = w_ref[...].astype(jnp.float32)
    col = jnp.sum(h * w, axis=-1)
    x = col[None, :] + b_ref[0]
    out_ref[...] = x.astype(out_ref.dtype)


def _row_tile(num_rows, hidden, itemsize):
    """Rows per grid step: keep one hidden tile <= ~8 MiB so two pipeline buffers fit
    every generation's scoped VMEM (v7x: 64 MiB physical / 32 MiB scoped)."""
    if num_rows <= 128:
        return num_rows                            # one block equal to the full array dims
    target_bytes = 8 * 1024 * 1024
    tr = max(128, target_bytes // max(1, hidden * itemsize))
    tr = min(tr, 2048, ((num_rows + 127) // 128) * 128)
    return max(128, (tr // 128) * 128)             # multiple of 128 -> lane-dense output block


def pooler_start_logits(hidden_states, weight, bias, p_mask=None):
    """hidden_states: (B, S, H); weight: (1, H); bias: (1,); p_mask: (B, S) or None."""
    B, S, H = hidden_states.shape
    R = B * S
    out_dtype = hidden_states.dtype
    # HF convention: fp16 modules mask with -65500, everything else with -1e30.
    penalty = 65500.0 if weight.dtype == jnp.float16 else 1e30

    h_flat = hidden_states.reshape(R, H)           # layout-free when S % 8 == 0
    w2d = weight.reshape(1, H)                     # native dtype; cast inside the kernel
    b1d = bias.reshape(1).astype(jnp.float32)      # single scalar -> SMEM

    itemsize = jnp.dtype(hidden_states.dtype).itemsize
    TR = _row_tile(R, H, itemsize)
    grid = (pl.cdiv(R, TR),)

    bytes_accessed = R * H * itemsize + H * itemsize + R * jnp.dtype(out_dtype).itemsize
    if p_mask is not None:
        bytes_accessed += R * jnp.dtype(p_mask.dtype).itemsize
    cost = pl.CostEstimate(flops=2 * R * H, transcendentals=0, bytes_accessed=bytes_accessed)

    compiler_params = pltpu.CompilerParams(
        dimension_semantics=("parallel",),
        vmem_limit_bytes=32 * 1024 * 1024,
    )

    h_spec = pl.BlockSpec((TR, H), lambda i: (i, 0))
    w_spec = pl.BlockSpec((1, H), lambda i: (0, 0))          # pinned; constant index -> no re-DMA
    b_spec = pl.BlockSpec(memory_space=pltpu.MemorySpace.SMEM)
    row_spec = pl.BlockSpec((1, TR), lambda i: (0, i))       # lane-dense (1, R) slab

    if p_mask is None:
        out = pl.pallas_call(
            _start_logits_kernel,
            out_shape=jax.ShapeDtypeStruct((1, R), out_dtype),
            grid_spec=pltpu.PrefetchScalarGridSpec(
                num_scalar_prefetch=0,
                grid=grid,
                in_specs=[h_spec, w_spec, b_spec],
                out_specs=row_spec,
            ),
            compiler_params=compiler_params,
            cost_estimate=cost,
        )(h_flat, w2d, b1d)
    else:
        m_flat = p_mask.reshape(1, R)                        # native dtype; cast in-kernel
        out = pl.pallas_call(
            functools.partial(_start_logits_masked_kernel, penalty=penalty),
            out_shape=jax.ShapeDtypeStruct((1, R), out_dtype),
            grid_spec=pltpu.PrefetchScalarGridSpec(
                num_scalar_prefetch=0,
                grid=grid,
                in_specs=[h_spec, w_spec, b_spec, row_spec],
                out_specs=row_spec,
            ),
            compiler_params=compiler_params,
            cost_estimate=cost,
        )(h_flat, w2d, b1d, m_flat)

    return out.reshape(B, S)


def _reference(hidden_states, weight, bias, p_mask):
    x = jnp.einsum("bsh,oh->bso", hidden_states.astype(jnp.float32),
                   weight.astype(jnp.float32))[..., 0] + bias.astype(jnp.float32)[0]
    if p_mask is not None:
        pm = p_mask.astype(jnp.float32)
        x = x * pm - 1e30 * (1.0 - pm)
    return x.astype(hidden_states.dtype)


if __name__ == "__main__":
    B, S, H = 2, 8, 32
    key = jax.random.PRNGKey(0)
    k_h, k_w, k_b, k_m = jax.random.split(key, 4)

    hidden_states = jax.random.normal(k_h, (B, S, H), dtype=jnp.float32)
    # nn.Linear(hidden_size, 1): weight (1, H), bias (1,)
    weight = jax.random.normal(k_w, (1, H), dtype=jnp.float32) * 0.02
    bias = jax.random.normal(k_b, (1,), dtype=jnp.float32) * 0.02
    p_mask = (jax.random.uniform(k_m, (B, S)) > 0.3).astype(jnp.float32)

    out = jax.block_until_ready(pooler_start_logits(hidden_states, weight, bias, p_mask))
    ref = _reference(hidden_states, weight, bias, p_mask)
    assert out.shape == (B, S)
    assert jnp.allclose(out, ref, rtol=1e-5, atol=1e-5), "mismatch vs reference (masked)"

    out_nomask = jax.block_until_ready(pooler_start_logits(hidden_states, weight, bias, None))
    ref_nomask = _reference(hidden_states, weight, bias, None)
    assert jnp.allclose(out_nomask, ref_nomask, rtol=1e-5, atol=1e-5), "mismatch (no mask)"

    print("KERNEL_OK")
</pallas_src>

<mosaic_0001>
module attributes {stable_mosaic.version = 11 : i64} {
  func.func @_start_logits_masked_kernel(%arg0: i32, %arg1: memref<16x32xf32, #tpu.memory_space<vmem>>, %arg2: memref<1x32xf32, #tpu.memory_space<vmem>>, %arg3: memref<1xf32, #tpu.memory_space<smem>>, %arg4: memref<1x16xf32, #tpu.memory_space<vmem>>, %arg5: memref<1x16xf32, #tpu.memory_space<vmem>>) attributes {dimension_semantics = [#tpu.dimension_semantics<parallel>], iteration_bounds = array<i64: 1>, scalar_prefetch = 0 : i64, scratch_operands = 0 : i64, tpu.core_type = #tpu.core_type<tc>, window_params = [{transform_indices = @transform_0, window_bounds = array<i64: 16, 32>}, {pipeline_mode = #tpu.pipeline_mode<synchronous>, transform_indices = @transform_1, window_bounds = array<i64: 1, 32>}, {transform_indices = @transform_2, window_bounds = array<i64: 1>}, {transform_indices = @transform_3, window_bounds = array<i64: 1, 16>}, {transform_indices = @transform_4, window_bounds = array<i64: 1, 16>}]} {
    %c0 = arith.constant 0 : index
    %c0_0 = arith.constant 0 : index
    %0 = vector.load %arg1[%c0, %c0_0] : memref<16x32xf32, #tpu.memory_space<vmem>>, vector<16x32xf32>
    %c0_1 = arith.constant 0 : index
    %c0_2 = arith.constant 0 : index
    %1 = vector.load %arg2[%c0_1, %c0_2] : memref<1x32xf32, #tpu.memory_space<vmem>>, vector<1x32xf32>
    %2 = vector.broadcast %1 : vector<1x32xf32> to vector<16x32xf32>
    %3 = arith.mulf %0, %2 : vector<16x32xf32>
    %cst = arith.constant dense<0.000000e+00> : vector<16xf32>
    %4 = vector.multi_reduction <add>, %3, %cst [1] : vector<16x32xf32> to vector<16xf32>
    %5 = vector.shape_cast %4 : vector<16xf32> to vector<1x16xf32>
    %c0_3 = arith.constant 0 : index
    %6 = memref.load %arg3[%c0_3] : memref<1xf32, #tpu.memory_space<smem>>
    %7 = vector.broadcast %6 : f32 to vector<1x16xf32>
    %8 = arith.addf %5, %7 : vector<1x16xf32>
    %c0_4 = arith.constant 0 : index
    %c0_5 = arith.constant 0 : index
    %9 = vector.load %arg4[%c0_4, %c0_5] : memref<1x16xf32, #tpu.memory_space<vmem>>, vector<1x16xf32>
    %10 = arith.mulf %8, %9 : vector<1x16xf32>
    %cst_6 = arith.constant 1.000000e+00 : f32
    %11 = vector.broadcast %cst_6 : f32 to vector<1x16xf32>
    %12 = arith.subf %11, %9 : vector<1x16xf32>
    %cst_7 = arith.constant 1.000000e+30 : f32
    %13 = vector.broadcast %cst_7 : f32 to vector<1x16xf32>
    %14 = arith.mulf %13, %12 : vector<1x16xf32>
    %15 = arith.subf %10, %14 : vector<1x16xf32>
    %c0_8 = arith.constant 0 : index
    %c0_9 = arith.constant 0 : index
    %16 = vector.load %arg5[%c0_8, %c0_9] : memref<1x16xf32, #tpu.memory_space<vmem>>, vector<1x16xf32>
    tpu.vector_store %arg5[%c0_8, %c0_9], %15 {strides = array<i32>} : memref<1x16xf32, #tpu.memory_space<vmem>>, vector<1x16xf32>,
    return
  }
  func.func @transform_0(%arg0: i32) -> (i32, i32) {
    %c0_i32 = arith.constant 0 : i32
    %c0_i32_0 = arith.constant 0 : i32
    return %arg0, %c0_i32 : i32, i32
  }
  func.func @transform_1(%arg0: i32) -> (i32, i32) {
    %c0_i32 = arith.constant 0 : i32
    %c0_i32_0 = arith.constant 0 : i32
    %c0_i32_1 = arith.constant 0 : i32
    return %c0_i32, %c0_i32_0 : i32, i32
  }
  func.func @transform_2(%arg0: i32) -> i32 {
    %c0_i32 = arith.constant 0 : i32
    %c0_i32_0 = arith.constant 0 : i32
    return %c0_i32 : i32
  }
  func.func @transform_3(%arg0: i32) -> (i32, i32) {
    %c0_i32 = arith.constant 0 : i32
    %c0_i32_0 = arith.constant 0 : i32
    return %c0_i32, %arg0 : i32, i32
  }
  func.func @transform_4(%arg0: i32) -> (i32, i32) {
    %c0_i32 = arith.constant 0 : i32
    %c0_i32_0 = arith.constant 0 : i32
    return %c0_i32, %arg0 : i32, i32
  }
}

</mosaic_0001>

<bundles_post_ra>
// kernel: tpu_custom_call.1
= control target key start
LH: loop header
LB: loop body
LE: loop exit
PB: predicated region body
PF: predicated region fallthrough
CT: control target
= control target key end

     0   :  { %10 = vsyncpa [#allocation4], 0  ;;  %s248_s0 = inlined_call_operand.hbm [shape: f32[16,32], index: 0, kind: input, shape index: {}]   ;;  %s249_s1 = inlined_call_operand.vmem [shape: f32[1,32], index: 1, kind: input, shape index: {}]   ;;  %s250_s2 = inlined_call_operand.<no memory space> [shape: f32[1], index: 2, kind: input, shape index: {}]   ;;  %s251_s3 = inlined_call_operand.vmem [shape: f32[1,16], index: 3, kind: input, shape index: {}]   ;;  %s252_s4 = inlined_call_operand.hbm [shape: f32[1,16], index: 4, kind: output, shape index: {}]  }
   0x1   :  { %11 = vsyncpa [#allocation5], 0  ;;  %s185_s15 = smov [#allocation3]   ;;  %s137_s19 = scalar_lea.hbm %s248_s0, 256 }
   0x2   :  { %s17_s16 = sshll.u32 %s185_s15, 4  ;;  %p138_p0 = scmp.ne.s32.totalorder %s248_s0, %s137_s19  ;;  %s18_s16 = int_to_ptr.vmem [resolvable:$true] %s17_s16 }
   0x3   :  { %p141_p1 = scmp.lt.u32.totalorder %s137_s19, %s248_s0 }
   0x5   :  { %p143_p2 = pnand %p141_p1, %p138_p0 }
   0x7   :  { %146 = shalt.err (!%p143_p2)
}
   0x8   :  { %s147_s24 = scalar_lea.vmem %s18_s16, 256  ;;  %p152_p4 = scmp.lt.s32.totalorder %s18_s16, %s18_s16 }
   0x9   :  { %p148_p3 = scmp.ne.s32.totalorder %s18_s16, %s147_s24  ;;  %p153_p5 = scmp.lt.s32.totalorder %s147_s24, %s147_s24 }
   0xb   :  { %p154_p6 = por %p153_p5, %p152_p4 }
   0xd   :  { %p155_p7 = pnand %p154_p6, %p148_p3 }
   0xf   :  { %158 = shalt.err (!%p155_p7)
}
  0x10   :  { %s186_s25 = smov 128   ;;  %s187_s26 = smov 8  }
  0x11   :  { %23 = dma.hbm_to_vmem [thread:$0]  %s248_s0, 256, %s18_s16, [#allocation4], %s186_s25, %s186_s25, %s187_s26  }
  0x12   :  { %181 = dma.done.wait [#allocation4], 256  }
  0x13   :  { %182 = vsyncadd [#allocation4], 4294967040  ;;  %v57_v0 = vlaneseq  ;;  %v33_v3 = vld [vmem:[#allocation3] sm:$0xff]  ;;  %vm44_vm0 = vcmask 261120   ;;  %v34_v5 = vld [vmem:[#allocation3 + $0x8] sm:$0xff]  ;;  %v188_v15 = vmov 0   ;;  %v52_v17 = vstv %s250_s2 }
  0x14   :  { %v129_v4 = vld [vmem:[%s249_s1] ss:$0 sm:$0xff]  ;;  %135 = vset.pattern.permute.xlu1 %v188_v15  ;;  %136 = vset.pattern.permute.xlu0 %v188_v15  ;;  %vm109_vm1 = vcmask 130112   ;;  %vm112_vm2 = vcmask 122880  }
  0x15   :  { %v58_v1 = vshrl.u32 %v57_v0, 7  ;;  %v42_v6 = vmul.f32 %v129_v4, %v33_v3  ;;  %v43_v7 = vmul.f32 %v129_v4, %v34_v5  ;;  %v55_v8 = vld [vmem:[%s251_s3] sm:$0x1]  ;;  %v99_v29 = vand.u32 127, %v57_v0  ;;  %s189_s3 = smov [#allocation6]  }
  0x16   :  { %v72_v10 = vsub.f32 1.0, %v55_v8  ;;  %s120_s2 = sshll.u32 %s189_s3, 4  ;;  %s121_s2 = int_to_ptr.vmem [resolvable:$true] %s120_s2 }
  0x17   :  { %v59_v2 = vsub.s32 0, %v58_v1  ;;  %v45_v11 = vsel %vm44_vm0, %v42_v6, 0.0  ;;  %v48_v13 = vsel %vm44_vm0, %v43_v7, 0.0  ;;  %v104_v30 = vadd.s32 4294967288, %v99_v29  ;;  %s159_s7 = scalar_lea.vmem %s121_s2, 16  ;;  %s163_s8 = scalar_lea.vmem %s121_s2, 32 }
  0x18   :  { %46 = vadd.xlane.f32.xlu0 %v45_v11  ;;  %v73_v12 = vmul.f32 1e+30, %v72_v10  ;;  %v102_v32 = vsub.s32 %v99_v29, %v58_v1  ;;  %p160_p8 = scmp.ne.s32.totalorder %s121_s2, %s159_s7  ;;  %p164_p9 = scmp.lt.s32.totalorder %s121_s2, %s121_s2 }
  0x19   :  { %v60_v9 = vrot.slane %v55_v8, %v59_v2  ;;  %v107_v33 = vsub.s32 %v104_v30, %v58_v1  ;;  %p165_p10 = scmp.lt.s32.totalorder %s163_s8, %s159_s7 }
  0x1a   :  { %v78_v14 = vrot.slane %v73_v12, %v59_v2 }
  0x1b   :  { %62 = vbcast.lane.b32.xlu1 %v60_v9, 256  ;;  %p166_p11 = por %p165_p10, %p164_p9 }
  0x1c   :  { %49 = vadd.xlane.f32.xlu0 %v48_v13 }
  0x1d   :  { %p167_p12 = pnand %p166_p11, %p160_p8 }
  0x1f   :  { %66 = vbcast.lane.b32.xlu1 %v60_v9, 264 }
  0x23   :  { %84 = vbcast.lane.b32.xlu1 %v78_v14, 264 }
  0x32   :  { %80 = vbcast.lane.b32.xlu0 %v78_v14, 256 }
  0x8d   :  { %v63_v16 = vpop.permute.xlu1 %62 }
  0x91   :  { %v67_v20 = vpop.permute.xlu1 %66 }
  0x95   :  { %v85_v27 = vpop.permute.xlu1 %84 }
  0xa5   :  { %v47_v18 = vpop.xlane.xlu0 %46 }
  0xa6   :  { %v53_v19 = vadd.f32 %v52_v17, %v47_v18 }
  0xa8   :  { %v70_v23 = vmul.f32 %v63_v16, %v53_v19 }
  0xa9   :  { %v50_v21 = vpop.xlane.xlu0 %49 }
  0xaa   :  { %v54_v22 = vadd.f32 %v52_v17, %v50_v21 }
  0xac   :  { %v71_v25 = vmul.f32 %v67_v20, %v54_v22 }
  0xad   :  { %v81_v24 = vpop.permute.xlu0 %80 }
  0xae   :  { %v88_v26 = vsub.f32 %v70_v23, %v81_v24  ;;  %v89_v28 = vsub.f32 %v71_v25, %v85_v27 }
  0xb0   :  { %93 = vperm.xlu1 %135, %v88_v26  }
  0xb4   :  { %96 = vperm.xlu1 %135, %v89_v28  }
 0x12f   :  { %v94_v31 = vpop.permute.xlu1 %93 }
 0x130   :  { %v103_v35 = vrot.slane %v94_v31, %v102_v32 }
 0x133   :  { %v97_v34 = vpop.permute.xlu1 %96 }
 0x134   :  { %v108_v36 = vrot.slane %v97_v34, %v107_v33 }
 0x136   :  { %v110_v37 = vsel %vm109_vm1, %v108_v36, %v103_v35 }
 0x137   :  { %113 = vst.msk [vmem:[#allocation6] sm:$0x1] %vm112_vm2, %v110_v37 }
 0x138   :  { %170 = shalt.err (!%p167_p12)
}
 0x139   :  { %s171_s11 = scalar_lea.hbm %s252_s4, 16 }
 0x13a   :  { %p172_p13 = scmp.ne.s32.totalorder %s252_s4, %s171_s11  ;;  %p175_p0 = scmp.lt.u32.totalorder %s171_s11, %s252_s4 }
 0x13c   :  { %p177_p1 = pnand %p175_p0, %p172_p13 }
 0x13e   :  { %180 = shalt.err (!%p177_p1)
}
 0x13f   :  { %123 = dma.vmem_to_hbm [thread:$0]  %s121_s2, 16, %s252_s4, [#allocation5]  }
 0x140   :  { %183 = dma.done.wait [#allocation5], 16  }
 0x141   :  { %184 = vsyncadd [#allocation5], 4294967280 }
 0x142   :  { %127 = vsyncpa [#allocation4], 1 }
 0x143   :  { %128 = vsyncpa [#allocation5], 1 }

</bundles_post_ra>
